<compile_context>
chip_gen: v6e
topology: v6e:2x2x1
jax: 0.10.0
libtpu: 0.0.40
codegen_flags: <defaults>
</compile_context>

<pallas_src>
import functools

import jax
import jax.numpy as jnp
from jax import lax
from jax.experimental import pallas as pl
from jax.experimental.pallas import tpu as pltpu


def _round_up(x, m):
    return ((x + m - 1) // m) * m


def _prediction_kernel(x_ref, w1_ref, b1_ref, w2_ref, b2_ref, label_ref,
                       nll_ref, pred_ref):
    # ---- MLP: Linear -> ReLU -> Linear (MXU, bf16 inputs, f32 accumulate) ----
    x = x_ref[...]                                              # (TB, Din) bf16
    h = jnp.dot(x, w1_ref[...],
                preferred_element_type=jnp.float32) + b1_ref[...]
    h = jnp.maximum(h, 0.0)                                     # ReLU
    logits = jnp.dot(h, w2_ref[...],
                     preferred_element_type=jnp.float32) + b2_ref[...]  # (TB, C)

    tb, c = logits.shape

    # ---- per-row cross-entropy (max-stabilized log-softmax) ------------------
    m = jnp.max(logits, axis=1, keepdims=True)                  # (TB, 1)
    z = logits - m
    lse = jnp.log(jnp.sum(jnp.exp(z), axis=1, keepdims=True))   # (TB, 1)

    labels = label_ref[...]                                     # (TB, 1) int32
    cls_iota = lax.broadcasted_iota(jnp.int32, (tb, c), 1)      # (TB, C)
    z_label = jnp.sum(jnp.where(cls_iota == labels, z, 0.0),
                      axis=1, keepdims=True)                    # (TB, 1)
    nll_ref[...] = lse - z_label                                # per-row NLL

    # ---- prediction = argmax(logits, dim=1), first-index tiebreak ------------
    # Reuses `m` (no second cross-lane max reduction).
    idx = jnp.where(logits == m, cls_iota, c)
    pred_ref[...] = jnp.min(idx, axis=1, keepdims=True)


@functools.partial(jax.jit, static_argnames=("tb",))
def prediction_network_forward(h_n, w1, b1, w2, b2, labels, *, tb=1024):
    """Returns (classification_loss scalar, prediction [B] int32)."""
    B, Din = h_n.shape
    H = w1.shape[1]
    C = w2.shape[1]

    TB = min(tb, _round_up(B, 8))
    num_tiles = pl.cdiv(B, TB)
    B_pad = num_tiles * TB

    # bf16 feed of the dominant HBM stream.  (In the real model the producer
    # of h_n should emit bf16 directly so this cast is free.)
    x = h_n.astype(jnp.bfloat16)
    w1b = w1.astype(jnp.bfloat16)
    b1r = b1.reshape(1, H).astype(jnp.float32)
    b2r = b2.reshape(1, C).astype(jnp.float32)
    w2f = w2.astype(jnp.float32)
    lab = labels.reshape(B, 1).astype(jnp.int32)
    if B_pad != B:   # ragged last tile: pad; padded rows are sliced off below
        x = jnp.pad(x, ((0, B_pad - B), (0, 0)))
        lab = jnp.pad(lab, ((0, B_pad - B), (0, 0)))

    nll, pred = pl.pallas_call(
        _prediction_kernel,
        out_shape=(
            jax.ShapeDtypeStruct((B_pad, 1), jnp.float32),   # per-row NLL
            jax.ShapeDtypeStruct((B_pad, 1), jnp.int32),     # per-row argmax
        ),
        grid=(num_tiles,),
        in_specs=[
            pl.BlockSpec((TB, Din), lambda i: (i, 0)),       # x tile (pipelined)
            pl.BlockSpec((Din, H), lambda i: (0, 0)),        # w1 (VMEM-resident)
            pl.BlockSpec((1, H), lambda i: (0, 0)),          # b1
            pl.BlockSpec((H, C), lambda i: (0, 0)),          # w2
            pl.BlockSpec((1, C), lambda i: (0, 0)),          # b2
            pl.BlockSpec((TB, 1), lambda i: (i, 0)),         # labels tile
        ],
        out_specs=(
            pl.BlockSpec((TB, 1), lambda i: (i, 0)),
            pl.BlockSpec((TB, 1), lambda i: (i, 0)),
        ),
        compiler_params=pltpu.CompilerParams(
            dimension_semantics=("parallel",),
            vmem_limit_bytes=32 * 1024 * 1024,
        ),
    )(x, w1b, b1r, w2f, b2r, lab)

    # Stage-2 reduction (tiny, in XLA): mean over the *true* batch rows only.
    loss = jnp.sum(nll[:B, 0]) * (1.0 / B)
    return loss, pred[:B, 0]


def _reference(h_n, w1, b1, w2, b2, labels):
    x = h_n.astype(jnp.bfloat16)
    h = jnp.maximum(
        jnp.dot(x, w1.astype(jnp.bfloat16),
                preferred_element_type=jnp.float32) + b1.reshape(1, -1), 0.0)
    logits = jnp.dot(h, w2, preferred_element_type=jnp.float32) + b2.reshape(1, -1)
    logp = jax.nn.log_softmax(logits, axis=1)
    loss = -jnp.mean(logp[jnp.arange(h_n.shape[0]), labels])
    pred = jnp.argmax(logits, axis=1)
    return loss, pred


if __name__ == "__main__":
    # Small, shape-consistent config: eh_size=32 -> input dim 64, class_num=4.
    EH, C = 32, 4
    DIN = 2 * EH

    key = jax.random.PRNGKey(0)
    k_x, k_w1, k_b1, k_w2, k_b2, k_lab = jax.random.split(key, 6)

    def make_inputs(batch):
        h_n = jax.random.normal(k_x, (batch, DIN), dtype=jnp.float32)
        w1 = 0.1 * jax.random.normal(k_w1, (DIN, EH), dtype=jnp.float32)
        b1 = 0.1 * jax.random.normal(k_b1, (EH,), dtype=jnp.float32)
        w2 = 0.1 * jax.random.normal(k_w2, (EH, C), dtype=jnp.float32)
        b2 = 0.1 * jax.random.normal(k_b2, (C,), dtype=jnp.float32)
        labels = jax.random.randint(k_lab, (batch,), 0, C, dtype=jnp.int32)
        return h_n, w1, b1, w2, b2, labels

    # Case 1: B=8, single tile.
    args = make_inputs(8)
    loss, pred = prediction_network_forward(*args)
    jax.block_until_ready((loss, pred))
    ref_loss, ref_pred = _reference(*args)
    assert jnp.allclose(loss, ref_loss, atol=2e-3, rtol=2e-3), (loss, ref_loss)
    assert jnp.array_equal(pred, ref_pred)

    # Case 2: B=20 with tb=8 -> multi-tile parallel grid + ragged (padded) tail.
    args = make_inputs(20)
    loss, pred = prediction_network_forward(*args, tb=8)
    jax.block_until_ready((loss, pred))
    ref_loss, ref_pred = _reference(*args)
    assert jnp.allclose(loss, ref_loss, atol=2e-3, rtol=2e-3), (loss, ref_loss)
    assert jnp.array_equal(pred, ref_pred)

    # TODO(synk): sent_str / show_str (dm.convert_ids_to_tokens + string joins)
    # are host-side Python with no tensor compute; not implemented in-kernel.
    print("KERNEL_OK")
</pallas_src>

<mosaic_0001>
module attributes {stable_mosaic.version = 11 : i64} {
  func.func @_prediction_kernel(%arg0: i32, %arg1: memref<8x64xbf16, #tpu.memory_space<vmem>>, %arg2: memref<64x32xbf16, #tpu.memory_space<vmem>>, %arg3: memref<1x32xf32, #tpu.memory_space<vmem>>, %arg4: memref<32x4xf32, #tpu.memory_space<vmem>>, %arg5: memref<1x4xf32, #tpu.memory_space<vmem>>, %arg6: memref<8x1xi32, #tpu.memory_space<vmem>>, %arg7: memref<8x1xf32, #tpu.memory_space<vmem>>, %arg8: memref<8x1xi32, #tpu.memory_space<vmem>>) attributes {dimension_semantics = [#tpu.dimension_semantics<parallel>], iteration_bounds = array<i64: 1>, scalar_prefetch = 0 : i64, scratch_operands = 0 : i64, tpu.core_type = #tpu.core_type<tc>, window_params = [{transform_indices = @transform_0, window_bounds = array<i64: 8, 64>}, {pipeline_mode = #tpu.pipeline_mode<synchronous>, transform_indices = @transform_1, window_bounds = array<i64: 64, 32>}, {pipeline_mode = #tpu.pipeline_mode<synchronous>, transform_indices = @transform_2, window_bounds = array<i64: 1, 32>}, {pipeline_mode = #tpu.pipeline_mode<synchronous>, transform_indices = @transform_3, window_bounds = array<i64: 32, 4>}, {pipeline_mode = #tpu.pipeline_mode<synchronous>, transform_indices = @transform_4, window_bounds = array<i64: 1, 4>}, {transform_indices = @transform_5, window_bounds = array<i64: 8, 1>}, {transform_indices = @transform_6, window_bounds = array<i64: 8, 1>}, {transform_indices = @transform_7, window_bounds = array<i64: 8, 1>}]} {
    %c0 = arith.constant 0 : index
    %c0_0 = arith.constant 0 : index
    %0 = vector.load %arg1[%c0, %c0_0] : memref<8x64xbf16, #tpu.memory_space<vmem>>, vector<8x64xbf16>
    %c0_1 = arith.constant 0 : index
    %c0_2 = arith.constant 0 : index
    %1 = vector.load %arg2[%c0_1, %c0_2] : memref<64x32xbf16, #tpu.memory_space<vmem>>, vector<64x32xbf16>
    %cst = arith.constant dense<0.000000e+00> : vector<8x32xf32>
    %2 = tpu.matmul %0, %1, %cst {dimension_numbers = #tpu.dot_dimension_numbers<[1], [0], [0], [1], [0, 0, 1, 1], [], []>} : vector<8x64xbf16>, vector<64x32xbf16>, vector<8x32xf32> -> vector<8x32xf32>
    %c0_3 = arith.constant 0 : index
    %c0_4 = arith.constant 0 : index
    %3 = vector.load %arg3[%c0_3, %c0_4] : memref<1x32xf32, #tpu.memory_space<vmem>>, vector<1x32xf32>
    %4 = vector.broadcast %3 : vector<1x32xf32> to vector<8x32xf32>
    %5 = arith.addf %2, %4 : vector<8x32xf32>
    %cst_5 = arith.constant 0.000000e+00 : f32
    %6 = vector.broadcast %cst_5 : f32 to vector<8x32xf32>
    %7 = arith.maximumf %5, %6 : vector<8x32xf32>
    %c0_6 = arith.constant 0 : index
    %c0_7 = arith.constant 0 : index
    %8 = vector.load %arg4[%c0_6, %c0_7] : memref<32x4xf32, #tpu.memory_space<vmem>>, vector<32x4xf32>
    %cst_8 = arith.constant dense<0.000000e+00> : vector<8x4xf32>
    %9 = tpu.matmul %7, %8, %cst_8 {dimension_numbers = #tpu.dot_dimension_numbers<[1], [0], [0], [1], [0, 0, 1, 1], [], []>} : vector<8x32xf32>, vector<32x4xf32>, vector<8x4xf32> -> vector<8x4xf32>
    %c0_9 = arith.constant 0 : index
    %c0_10 = arith.constant 0 : index
    %10 = vector.load %arg5[%c0_9, %c0_10] : memref<1x4xf32, #tpu.memory_space<vmem>>, vector<1x4xf32>
    %11 = vector.broadcast %10 : vector<1x4xf32> to vector<8x4xf32>
    %12 = arith.addf %9, %11 : vector<8x4xf32>
    %cst_11 = arith.constant dense<0xFF800000> : vector<8xf32>
    %13 = vector.multi_reduction <maximumf>, %12, %cst_11 [1] : vector<8x4xf32> to vector<8xf32>
    %14 = vector.shape_cast %13 : vector<8xf32> to vector<8x1xf32>
    %15 = vector.broadcast %14 : vector<8x1xf32> to vector<8x4xf32>
    %16 = arith.subf %12, %15 : vector<8x4xf32>
    %17 = math.exp %16 : vector<8x4xf32>
    %cst_12 = arith.constant dense<0.000000e+00> : vector<8xf32>
    %18 = vector.multi_reduction <add>, %17, %cst_12 [1] : vector<8x4xf32> to vector<8xf32>
    %19 = vector.shape_cast %18 : vector<8xf32> to vector<8x1xf32>
    %20 = math.log %19 : vector<8x1xf32>
    %c0_13 = arith.constant 0 : index
    %c0_14 = arith.constant 0 : index
    %21 = vector.load %arg6[%c0_13, %c0_14] : memref<8x1xi32, #tpu.memory_space<vmem>>, vector<8x1xi32>
    %22 = tpu.iota {dimensions = array<i32: 1>} : vector<8x4xi32>
    %23 = vector.broadcast %21 : vector<8x1xi32> to vector<8x4xi32>
    %24 = arith.cmpi eq, %22, %23 : vector<8x4xi32>
    %cst_15 = arith.constant 0.000000e+00 : f32
    %25 = vector.broadcast %cst_15 : f32 to vector<8x4xf32>
    %26 = arith.select %24, %16, %25 : vector<8x4xi1>, vector<8x4xf32>
    %cst_16 = arith.constant dense<0.000000e+00> : vector<8xf32>
    %27 = vector.multi_reduction <add>, %26, %cst_16 [1] : vector<8x4xf32> to vector<8xf32>
    %28 = vector.shape_cast %27 : vector<8xf32> to vector<8x1xf32>
    %29 = arith.subf %20, %28 : vector<8x1xf32>
    %c0_17 = arith.constant 0 : index
    %c0_18 = arith.constant 0 : index
    %30 = vector.load %arg7[%c0_17, %c0_18] : memref<8x1xf32, #tpu.memory_space<vmem>>, vector<8x1xf32>
    tpu.vector_store %arg7[%c0_17, %c0_18], %29 {strides = array<i32>} : memref<8x1xf32, #tpu.memory_space<vmem>>, vector<8x1xf32>,
    %31 = vector.broadcast %14 : vector<8x1xf32> to vector<8x4xf32>
    %32 = arith.cmpf oeq, %12, %31 : vector<8x4xf32>
    %c4_i32 = arith.constant 4 : i32
    %33 = vector.broadcast %c4_i32 : i32 to vector<8x4xi32>
    %34 = arith.select %32, %22, %33 : vector<8x4xi1>, vector<8x4xi32>
    %cst_19 = arith.constant dense<2147483647> : vector<8xi32>
    %35 = vector.multi_reduction <minsi>, %34, %cst_19 [1] : vector<8x4xi32> to vector<8xi32>
    %36 = vector.shape_cast %35 : vector<8xi32> to vector<8x1xi32>
    %c0_20 = arith.constant 0 : index
    %c0_21 = arith.constant 0 : index
    %37 = vector.load %arg8[%c0_20, %c0_21] : memref<8x1xi32, #tpu.memory_space<vmem>>, vector<8x1xi32>
    tpu.vector_store %arg8[%c0_20, %c0_21], %36 {strides = array<i32>} : memref<8x1xi32, #tpu.memory_space<vmem>>, vector<8x1xi32>,
    return
  }
  func.func @transform_0(%arg0: i32) -> (i32, i32) {
    %c0_i32 = arith.constant 0 : i32
    %c0_i32_0 = arith.constant 0 : i32
    return %arg0, %c0_i32 : i32, i32
  }
  func.func @transform_1(%arg0: i32) -> (i32, i32) {
    %c0_i32 = arith.constant 0 : i32
    %c0_i32_0 = arith.constant 0 : i32
    %c0_i32_1 = arith.constant 0 : i32
    return %c0_i32, %c0_i32_0 : i32, i32
  }
  func.func @transform_2(%arg0: i32) -> (i32, i32) {
    %c0_i32 = arith.constant 0 : i32
    %c0_i32_0 = arith.constant 0 : i32
    %c0_i32_1 = arith.constant 0 : i32
    return %c0_i32, %c0_i32_0 : i32, i32
  }
  func.func @transform_3(%arg0: i32) -> (i32, i32) {
    %c0_i32 = arith.constant 0 : i32
    %c0_i32_0 = arith.constant 0 : i32
    %c0_i32_1 = arith.constant 0 : i32
    return %c0_i32, %c0_i32_0 : i32, i32
  }
  func.func @transform_4(%arg0: i32) -> (i32, i32) {
    %c0_i32 = arith.constant 0 : i32
    %c0_i32_0 = arith.constant 0 : i32
    %c0_i32_1 = arith.constant 0 : i32
    return %c0_i32, %c0_i32_0 : i32, i32
  }
  func.func @transform_5(%arg0: i32) -> (i32, i32) {
    %c0_i32 = arith.constant 0 : i32
    %c0_i32_0 = arith.constant 0 : i32
    return %arg0, %c0_i32 : i32, i32
  }
  func.func @transform_6(%arg0: i32) -> (i32, i32) {
    %c0_i32 = arith.constant 0 : i32
    %c0_i32_0 = arith.constant 0 : i32
    return %arg0, %c0_i32 : i32, i32
  }
  func.func @transform_7(%arg0: i32) -> (i32, i32) {
    %c0_i32 = arith.constant 0 : i32
    %c0_i32_0 = arith.constant 0 : i32
    return %arg0, %c0_i32 : i32, i32
  }
}

</mosaic_0001>

<bundles_post_ra>
// kernel: prediction_network_forward.1
= control target key start
LH: loop header
LB: loop body
LE: loop exit
PB: predicated region body
PF: predicated region fallthrough
CT: control target
= control target key end

     0   :  { %v302_v0 = vmov 0.0   ;;  %vm303_vm0 = vmmov 0   ;;  %vm66_vm1 = vcmask 523264   ;;  %vm122_vm2 = vcmask 261120   ;;  %s391_s1 = inlined_call_operand.vmem [shape: bf16[64,32], index: 1, kind: input, shape index: {}]   ;;  %s392_s3 = inlined_call_operand.vmem [shape: f32[32,4], index: 3, kind: input, shape index: {}]   ;;  %s393_s0 = inlined_call_operand.vmem [shape: bf16[8,64], index: 0, kind: input, shape index: {}]   ;;  %s394_s2 = inlined_call_operand.vmem [shape: f32[1,32], index: 2, kind: input, shape index: {}]   ;;  %s395_s5 = inlined_call_operand.vmem [shape: s32[8,1], index: 5, kind: input, shape index: {}]   ;;  %s396_s4 = inlined_call_operand.vmem [shape: f32[1,4], index: 4, kind: input, shape index: {}]   ;;  %s397_s7 = inlined_call_operand.vmem [shape: s32[8,1], index: 7, kind: output, shape index: {1}]   ;;  %s398_s6 = inlined_call_operand.vmem [shape: f32[8,1], index: 6, kind: output, shape index: {0}]  }
   0x1   :  { %266 = vmatprep.subr.bf16.mxu0 %v302_v0  ;;  %v294_v1 = vld [vmem:[%s391_s1 + $0x18] sm:$0xff]   ;;  %274 = vmatprep.mubr.msk.bf16.mxu0 %vm303_vm0, %v302_v0  ;;  %v295_v2 = vld [vmem:[%s391_s1 + $0x10] sm:$0xff]   ;;  %v296_v4 = vld [vmem:[%s391_s1 + $0x8] sm:$0xff]   ;;  %v304_v17 = vmov 0   ;;  %vm196_vm3 = vcmask 31744   ;;  %v209_v24 = vlaneseq  ;;  %vm220_vm7 = vcmask 7168  }
   0x2   :  { %278 = vmatprep.subr.mxu1 %v302_v0  ;;  %286 = vmatprep.mubr.msk.f32.mxu1 %vm303_vm0, %v302_v0  ;;  %v114_v3 = vld [vmem:[%s392_s3 + $0x18] sm:$0xff]  ;;  %v297_v5 = vld [vmem:[%s391_s1] sm:$0xff]   ;;  %v113_v7 = vld [vmem:[%s392_s3 + $0x10] sm:$0xff] }
   0x3   :  { %267 = vmatpush3.bf16.msra.mxu0 %v294_v1  ;;  %279 = vmatpush3.msra.mxu1 %v114_v3  ;;  %v26_v6 = vld [vmem:[%s393_s0] sm:$0xf]  ;;  %v112_v8 = vld [vmem:[%s392_s3 + $0x8] sm:$0xff]  ;;  %v210_v25 = vand.u32 127, %v209_v24 }
   0x4   :  { %268 = vmatprep.subr.bf16.mxu0 %v302_v0  ;;  %280 = vmatprep.subr.mxu1 %v302_v0  ;;  %v111_v9 = vld [vmem:[%s392_s3] sm:$0xff] }
   0x5   :  { %281 = vmatpush3.msra.mxu1 %v113_v7  ;;  %v248_v10 = vld [vmem:[%s394_s2] ss:$0 sm:$0xff]  ;;  %292 = vset.pattern.permute.xlu1 %v304_v17 }
   0x6   :  { %282 = vmatprep.subr.mxu1 %v302_v0  ;;  %v208_v18 = vld [vmem:[%s395_s5] sm:$0xff]  ;;  %293 = vset.pattern.permute.xlu0 %v304_v17 }
   0x7   :  { %269 = vmatpush3.bf16.msra.mxu0 %v295_v2  ;;  %283 = vmatpush3.msra.mxu1 %v112_v8  ;;  %v254_v19 = vld [vmem:[%s396_s4] ss:$0 sm:$0xff] }
   0x8   :  { %270 = vmatprep.subr.bf16.mxu0 %v302_v0  ;;  %284 = vmatprep.subr.mxu1 %v302_v0 }
   0x9   :  { %285 = vmatpush3.msra.mxu1 %v111_v9  ;;  %212 = vperm.xlu1 %292, %v208_v18  }
   0xb   :  { %271 = vmatpush3.bf16.msra.mxu0 %v296_v4 }
   0xc   :  { %272 = vmatprep.subr.bf16.mxu0 %v302_v0 }
   0xf   :  { %273 = vmatpush3.bf16.msra.mxu0 %v297_v5 }
  0x12   :  { %275 = vmatmul.mubr.msk.bf16.vlgmr.msra.gmra.mxu0 %vm66_vm1, %v26_v6 }
  0x84   :  { %v213_v36 = vpop.permute.xlu1 %212 }
  0x85   :  { %vm214_vm5 = vcmp.eq.s32.totalorder %v210_v25, %v213_v36 }
  0xd2   :  { %v104_v11 = vpop.f32.mrf.mxu0 }
  0xd3   :  { %v105_v12 = vadd.f32 %v248_v10, %v104_v11 }
  0xd4   :  { %v276_v13 = vpop.f32.mrf.mxu0 }
  0xd5   :  { %v110_v14 = vmax.f32 %v105_v12, 0.0 }
  0xd6   :  { %v107_v15 = vpop.f32.mrf.mxu0 }
  0xd7   :  { %287 = vmatmul.mubr.msk.f32.vlgmr.msra.gmra.mxu1 %vm122_vm2, %v110_v14 }
  0xd8   :  { %v277_v16 = vpop.f32.mrf.mxu0 }
 0x197   :  { %v192_v20 = vpop.f32.mrf.mxu1 }
 0x198   :  { %v193_v21 = vadd.f32 %v254_v19, %v192_v20 }
 0x199   :  { %v288_v22 = vpop.f32.mrf.mxu1 }
 0x19a   :  { %v197_v23 = vsel %vm196_vm3, %v193_v21, -inf }
 0x19b   :  { %198 = vmax.xlane.f32.xlu0 %v197_v23 }
 0x224   :  { %v199_v26 = vpop.xlane.xlu0 %198 }
 0x225   :  { %v200_v27 = vsub.f32 %v193_v21, %v199_v26  ;;  %vm222_vm4 = vcmp.eq.f32.partialorder %v193_v21, %v199_v26 }
 0x226   :  { %v223_v28 = vsel %vm222_vm4, %v210_v25, 4 }
 0x227   :  { %v201_v29 = vmul.f32 1.442695, %v200_v27  ;;  %v224_v30 = vsel %vm196_vm3, %v223_v28, 2147483647  ;;  %v215_v40 = vsel %vm214_vm5, %v200_v27, 0.0 }
 0x228   :  { %v226_v31 = vshra.s32 %v224_v30, 16  ;;  %v225_v35 = vand.u32 65535, %v224_v30  ;;  %v216_v41 = vsel %vm196_vm3, %v215_v40, 0.0 }
 0x229   :  { %298 = vpow2.f32 %v201_v29 }
 0x22a   :  { %v228_v32 = vcvt.s32.f32 %v226_v31  ;;  %v227_v38 = vcvt.s32.f32 %v225_v35 }
 0x22c   :  { %229 = vmin.xlane.f32.xlu0 %v228_v32 }
 0x236   :  { %v299_v33 = vpop.eup %298 }
 0x237   :  { %v203_v34 = vsel %vm196_vm3, %v299_v33, 0.0 }
 0x238   :  { %204 = vadd.xlane.f32.xlu1 %v203_v34 }
 0x2b5   :  { %v230_v37 = vpop.xlane.xlu0 %229 }
 0x2b6   :  { %vm231_vm6 = vcmp.eq.f32.partialorder %v228_v32, %v230_v37  ;;  %v236_v43 = vcvt.f32.s32 %v230_v37 }
 0x2b7   :  { %v232_v39 = vsel %vm231_vm6, %v227_v38, inf }
 0x2b8   :  { %233 = vmin.xlane.f32.xlu0 %v232_v39  ;;  %v237_v46 = vshll.u32 %v236_v43, 16 }
 0x2bc   :  { %217 = vadd.xlane.f32.xlu0 %v216_v41 }
 0x2c1   :  { %v205_v42 = vpop.xlane.xlu1 %204 }
 0x2c2   :  { %300 = vlog2.f32 %v205_v42 }
 0x2cf   :  { %v301_v44 = vpop.eup %300 }
 0x2d0   :  { %v207_v49 = vmul.f32 0.6931472, %v301_v44 }
 0x341   :  { %v234_v45 = vpop.xlane.xlu0 %233 }
 0x342   :  { %v235_v47 = vcvt.f32.s32 %v234_v45 }
 0x344   :  { %v238_v48 = vadd.s32 %v237_v46, %v235_v47 }
 0x345   :  { %v218_v50 = vpop.xlane.xlu0 %217 }
 0x346   :  { %239 = vst.msk [vmem:[%s397_s7] sm:$0xff] %vm220_vm7, %v238_v48  ;;  %v219_v51 = vsub.f32 %v207_v49, %v218_v50 }
 0x348   :  { %221 = vst.msk [vmem:[%s398_s6] sm:$0xff] %vm220_vm7, %v219_v51 }

</bundles_post_ra>
